<compile_context>
chip_gen: v7x
topology: tpu7x:2x2x1
jax: 0.10.0
libtpu: 0.0.40
codegen_flags: <defaults>
</compile_context>

<pallas_src>
import math

import jax
import jax.numpy as jnp
from jax.experimental import pallas as pl
from jax.experimental.pallas import tpu as pltpu


def _round_up(v: int, m: int) -> int:
    return (v + m - 1) // m * m


def gcn_kernel(x_ref, adj_ref, w_ref, bias_ref, o_ref, acc_ref):
    # x_ref:    (Bt, TK, C_pad)  bf16  node-feature slab k for Bt batch elements
    # adj_ref:  (TM, TK)         bf16  adjacency tile (row tile i, col tile k)
    # w_ref:    (C_pad, F_pad)   bf16  shared weight   (constant block)
    # bias_ref: (1, F_pad)       f32   shared bias     (constant block)
    # o_ref:    (Bt, TM, F_pad)        output tile for (batch tile, row tile)
    # acc_ref:  (Bt, TM, C_pad)  f32   running (adj @ x) accumulator
    k = pl.program_id(2)
    n_k = pl.num_programs(2)
    bt = x_ref.shape[0]

    @pl.when(k == 0)
    def _init():
        acc_ref[...] = jnp.zeros_like(acc_ref)

    adj_tile = adj_ref[...]                              # (TM, TK)
    for b in range(bt):                                  # small static unroll
        acc_ref[b] += jnp.dot(adj_tile, x_ref[b],
                              preferred_element_type=jnp.float32)

    @pl.when(k == n_k - 1)
    def _finalize():
        w = w_ref[...]                                   # (C_pad, F_pad) bf16
        bias = bias_ref[...]                             # (1, F_pad)     f32
        for b in range(bt):
            agg = acc_ref[b].astype(w.dtype)             # f32 acc -> bf16 for MXU
            out = jnp.dot(agg, w, preferred_element_type=jnp.float32)
            o_ref[b] = (out + bias).astype(o_ref.dtype)  # fused bias epilogue


def graph_convolution(x, weight, adj, bias):
    """x: (B, N, C), weight: (C, F), adj: (N, N), bias: (F,) -> (B, N, F)"""
    B, N, C = x.shape
    F = weight.shape[1]
    out_dtype = x.dtype
    out_itemsize = jnp.dtype(out_dtype).itemsize

    # --- per-generation tile / VMEM budget ----------------------------------
    try:
        vmem_cap = pltpu.get_tpu_info().vmem_capacity_bytes
    except Exception:
        vmem_cap = 64 * 1024 * 1024                      # conservative (v7x-like)
    if vmem_cap >= 100 * 1024 * 1024:                    # v5e / v6e: 128 MiB VMEM
        tile_cap = 512
        vmem_limit = 96 * 1024 * 1024
    else:                                                # v7x: 64 MiB per TC
        tile_cap = 256
        vmem_limit = 48 * 1024 * 1024

    # --- lane-dense padding ---------------------------------------------------
    C_pad = _round_up(C, 128)
    F_pad = _round_up(F, 128)
    N_pad = _round_up(N, 128)

    # Largest 128-multiple tile (<= tile_cap) dividing N_pad: lane-dense adj
    # blocks, minimal N padding, big DMA transfers where possible.
    TM = 128
    for cand in range(tile_cap, 127, -128):
        if N_pad % cand == 0:
            TM = cand
            break
    TK = TM

    # --- batch blocking: how many batch elements share one adj tile ----------
    fixed_bytes = (TM * TK * 2 * 2            # adj tile, bf16, double-buffered
                   + C_pad * F_pad * 2 * 2    # weight, bf16, double-buffered
                   + F_pad * 4 * 2)           # bias
    per_batch_bytes = (TK * C_pad * 2 * 2            # x tile, bf16, dbl-buffered
                       + TM * F_pad * out_itemsize * 2  # out tile, dbl-buffered
                       + TM * C_pad * 4)             # f32 accumulator
    avail = max(vmem_limit - fixed_bytes, per_batch_bytes)
    Bt = int(max(1, min(B, 8, avail // per_batch_bytes)))
    B_pad = _round_up(B, Bt)

    num_row_tiles = N_pad // TM
    num_k_tiles = N_pad // TK
    num_b_tiles = B_pad // Bt

    # Zero padding is exact (padded adj rows/cols, W rows/cols, bias cols and
    # padded batch elements contribute nothing to the valid region; sliced off).
    # bf16 streams with f32 accumulation inside the kernel; bias stays f32.
    x_p = jnp.pad(x, ((0, B_pad - B), (0, N_pad - N), (0, C_pad - C))
                  ).astype(jnp.bfloat16)
    adj_p = jnp.pad(adj, ((0, N_pad - N), (0, N_pad - N))).astype(jnp.bfloat16)
    w_p = jnp.pad(weight, ((0, C_pad - C), (0, F_pad - F))).astype(jnp.bfloat16)
    b_p = jnp.pad(bias.reshape(1, F), ((0, 0), (0, F_pad - F))
                  ).astype(jnp.float32)

    out_p = pl.pallas_call(
        gcn_kernel,
        out_shape=jax.ShapeDtypeStruct((B_pad, N_pad, F_pad), out_dtype),
        grid_spec=pltpu.PrefetchScalarGridSpec(
            num_scalar_prefetch=0,
            grid=(num_row_tiles, num_b_tiles, num_k_tiles),
            in_specs=[
                # x: Bt batch elements, k-th slab of nodes, all (padded) channels.
                pl.BlockSpec((Bt, TK, C_pad), lambda i, b, k: (b, k, 0)),
                # adj: row tile i, contraction tile k (reused across the Bt batch
                # elements inside the body -> Bt x less adj HBM traffic).
                pl.BlockSpec((TM, TK), lambda i, b, k: (i, k)),
                # weight / bias: constant blocks (not re-DMA'd across grid steps).
                pl.BlockSpec((C_pad, F_pad), lambda i, b, k: (0, 0)),
                pl.BlockSpec((1, F_pad), lambda i, b, k: (0, 0)),
            ],
            out_specs=pl.BlockSpec((Bt, TM, F_pad), lambda i, b, k: (b, i, 0)),
            scratch_shapes=[pltpu.VMEM((Bt, TM, C_pad), jnp.float32)],
        ),
        compiler_params=pltpu.CompilerParams(
            # Row-tile and batch axes write disjoint output tiles -> parallel
            # (megacore / v7x 2-TC sharding); contraction axis is the reduction.
            dimension_semantics=("parallel", "parallel", "arbitrary"),
            vmem_limit_bytes=vmem_limit,
        ),
    )(x_p, adj_p, w_p, b_p)

    return out_p[:B, :N, :F]


if __name__ == "__main__":
    # Small shapes consistent with the module's forward: input is (B, N, C).
    B, N, C, F = 2, 16, 8, 32

    key = jax.random.PRNGKey(0)
    k_x, k_w, k_b, k_adj = jax.random.split(key, 4)

    # Deterministic parameter init mirroring reset_parameters():
    # uniform(-stdv, stdv) with stdv = 1/sqrt(out_features).
    stdv = 1.0 / math.sqrt(F)
    weight = jax.random.uniform(k_w, (C, F), jnp.float32, minval=-stdv, maxval=stdv)
    bias = jax.random.uniform(k_b, (F,), jnp.float32, minval=-stdv, maxval=stdv)

    # TODO(synk): the PyTorch module loads adj from mat_path via np.load; here a
    # deterministic row-normalized adjacency is synthesized in-script instead.
    adj_raw = jax.random.uniform(k_adj, (N, N), jnp.float32)
    adj = adj_raw / jnp.sum(adj_raw, axis=-1, keepdims=True)

    x = jax.random.normal(k_x, (B, N, C), jnp.float32)

    out = graph_convolution(x, weight, adj, bias)
    out = jax.block_until_ready(out)

    # Reference check (plain JAX, f32) — same semantics as the PyTorch forward.
    ref = jnp.einsum("nm,bmf->bnf", adj, jnp.einsum("bnc,cf->bnf", x, weight)) + bias
    assert out.shape == (B, N, F)
    # Inputs are streamed in bf16 (f32 accumulation), so tolerance is slightly
    # looser than a pure-f32 kernel would need.
    assert jnp.allclose(out, ref, atol=3e-2, rtol=3e-2), "mismatch vs reference"

    print("KERNEL_OK")
</pallas_src>

<mosaic_0001>
module attributes {stable_mosaic.version = 11 : i64} {
  func.func @gcn_kernel(%arg0: i32, %arg1: i32, %arg2: i32, %arg3: memref<2x128x128xbf16, #tpu.memory_space<vmem>>, %arg4: memref<128x128xbf16, #tpu.memory_space<vmem>>, %arg5: memref<128x128xbf16, #tpu.memory_space<vmem>>, %arg6: memref<1x128xf32, #tpu.memory_space<vmem>>, %arg7: memref<2x128x128xf32, #tpu.memory_space<vmem>>, %arg8: memref<2x128x128xf32, #tpu.memory_space<vmem>>) attributes {dimension_semantics = [#tpu.dimension_semantics<parallel>, #tpu.dimension_semantics<parallel>, #tpu.dimension_semantics<arbitrary>], iteration_bounds = array<i64: 1, 1, 1>, scalar_prefetch = 0 : i64, scratch_operands = 1 : i64, tpu.core_type = #tpu.core_type<tc>, window_params = [{transform_indices = @transform_0, window_bounds = array<i64: 2, 128, 128>}, {transform_indices = @transform_1, window_bounds = array<i64: 128, 128>}, {pipeline_mode = #tpu.pipeline_mode<synchronous>, transform_indices = @transform_2, window_bounds = array<i64: 128, 128>}, {pipeline_mode = #tpu.pipeline_mode<synchronous>, transform_indices = @transform_3, window_bounds = array<i64: 1, 128>}, {transform_indices = @transform_4, window_bounds = array<i64: 2, 128, 128>}]} {
    %c0_i32 = arith.constant 0 : i32
    %0 = arith.cmpi eq, %arg2, %c0_i32 : i32
    %1 = arith.extui %0 : i1 to i32
    %c0_i32_0 = arith.constant 0 : i32
    %2 = arith.cmpi ne, %1, %c0_i32_0 : i32
    scf.if %2 {
      %cst_22 = arith.constant 0.000000e+00 : f32
      %25 = vector.broadcast %cst_22 : f32 to vector<2x128x128xf32>
      %c0_23 = arith.constant 0 : index
      %c0_24 = arith.constant 0 : index
      %c0_25 = arith.constant 0 : index
      %26 = vector.load %arg8[%c0_23, %c0_24, %c0_25] : memref<2x128x128xf32, #tpu.memory_space<vmem>>, vector<2x128x128xf32>
      tpu.vector_store %arg8[%c0_23, %c0_24, %c0_25], %25 {strides = array<i32>} : memref<2x128x128xf32, #tpu.memory_space<vmem>>, vector<2x128x128xf32>,
    } else {
    }
    %c0 = arith.constant 0 : index
    %c0_1 = arith.constant 0 : index
    %3 = vector.load %arg4[%c0, %c0_1] : memref<128x128xbf16, #tpu.memory_space<vmem>>, vector<128x128xbf16>
    %c0_2 = arith.constant 0 : index
    %c0_3 = arith.constant 0 : index
    %c0_4 = arith.constant 0 : index
    %4 = vector.load %arg8[%c0_2, %c0_3, %c0_4] : memref<2x128x128xf32, #tpu.memory_space<vmem>>, vector<1x128x128xf32>
    %5 = vector.shape_cast %4 : vector<1x128x128xf32> to vector<128x128xf32>
    %c0_5 = arith.constant 0 : index
    %c0_6 = arith.constant 0 : index
    %c0_7 = arith.constant 0 : index
    %6 = vector.load %arg3[%c0_5, %c0_6, %c0_7] : memref<2x128x128xbf16, #tpu.memory_space<vmem>>, vector<1x128x128xbf16>
    %7 = vector.shape_cast %6 : vector<1x128x128xbf16> to vector<128x128xbf16>
    %cst = arith.constant dense<0.000000e+00> : vector<128x128xf32>
    %8 = tpu.matmul %3, %7, %cst {dimension_numbers = #tpu.dot_dimension_numbers<[1], [0], [0], [1], [0, 0, 1, 1], [], []>} : vector<128x128xbf16>, vector<128x128xbf16>, vector<128x128xf32> -> vector<128x128xf32>
    %9 = arith.addf %5, %8 : vector<128x128xf32>
    %c0_8 = arith.constant 0 : index
    %c0_9 = arith.constant 0 : index
    %c0_10 = arith.constant 0 : index
    %10 = vector.load %arg8[%c0_8, %c0_9, %c0_10] : memref<2x128x128xf32, #tpu.memory_space<vmem>>, vector<1x128x128xf32>
    %11 = vector.shape_cast %10 : vector<1x128x128xf32> to vector<128x128xf32>
    %12 = vector.shape_cast %9 : vector<128x128xf32> to vector<1x128x128xf32>
    tpu.vector_store %arg8[%c0_8, %c0_9, %c0_10], %12 {strides = array<i32>} : memref<2x128x128xf32, #tpu.memory_space<vmem>>, vector<1x128x128xf32>,
    %c1 = arith.constant 1 : index
    %c0_11 = arith.constant 0 : index
    %c0_12 = arith.constant 0 : index
    %13 = vector.load %arg8[%c1, %c0_11, %c0_12] : memref<2x128x128xf32, #tpu.memory_space<vmem>>, vector<1x128x128xf32>
    %14 = vector.shape_cast %13 : vector<1x128x128xf32> to vector<128x128xf32>
    %c1_13 = arith.constant 1 : index
    %c0_14 = arith.constant 0 : index
    %c0_15 = arith.constant 0 : index
    %15 = vector.load %arg3[%c1_13, %c0_14, %c0_15] : memref<2x128x128xbf16, #tpu.memory_space<vmem>>, vector<1x128x128xbf16>
    %16 = vector.shape_cast %15 : vector<1x128x128xbf16> to vector<128x128xbf16>
    %cst_16 = arith.constant dense<0.000000e+00> : vector<128x128xf32>
    %17 = tpu.matmul %3, %16, %cst_16 {dimension_numbers = #tpu.dot_dimension_numbers<[1], [0], [0], [1], [0, 0, 1, 1], [], []>} : vector<128x128xbf16>, vector<128x128xbf16>, vector<128x128xf32> -> vector<128x128xf32>
    %18 = arith.addf %14, %17 : vector<128x128xf32>
    %c1_17 = arith.constant 1 : index
    %c0_18 = arith.constant 0 : index
    %c0_19 = arith.constant 0 : index
    %19 = vector.load %arg8[%c1_17, %c0_18, %c0_19] : memref<2x128x128xf32, #tpu.memory_space<vmem>>, vector<1x128x128xf32>
    %20 = vector.shape_cast %19 : vector<1x128x128xf32> to vector<128x128xf32>
    %21 = vector.shape_cast %18 : vector<128x128xf32> to vector<1x128x128xf32>
    tpu.vector_store %arg8[%c1_17, %c0_18, %c0_19], %21 {strides = array<i32>} : memref<2x128x128xf32, #tpu.memory_space<vmem>>, vector<1x128x128xf32>,
    %c0_i32_20 = arith.constant 0 : i32
    %22 = arith.cmpi eq, %arg2, %c0_i32_20 : i32
    %23 = arith.extui %22 : i1 to i32
    %c0_i32_21 = arith.constant 0 : i32
    %24 = arith.cmpi ne, %23, %c0_i32_21 : i32
    scf.if %24 {
      %c0_22 = arith.constant 0 : index
      %c0_23 = arith.constant 0 : index
      %25 = vector.load %arg5[%c0_22, %c0_23] : memref<128x128xbf16, #tpu.memory_space<vmem>>, vector<128x128xbf16>
      %c0_24 = arith.constant 0 : index
      %c0_25 = arith.constant 0 : index
      %26 = vector.load %arg6[%c0_24, %c0_25] : memref<1x128xf32, #tpu.memory_space<vmem>>, vector<1x128xf32>
      %c0_26 = arith.constant 0 : index
      %c0_27 = arith.constant 0 : index
      %c0_28 = arith.constant 0 : index
      %27 = vector.load %arg8[%c0_26, %c0_27, %c0_28] : memref<2x128x128xf32, #tpu.memory_space<vmem>>, vector<1x128x128xf32>
      %28 = vector.shape_cast %27 : vector<1x128x128xf32> to vector<128x128xf32>
      %29 = arith.truncf %28 : vector<128x128xf32> to vector<128x128xbf16>
      %cst_29 = arith.constant dense<0.000000e+00> : vector<128x128xf32>
      %30 = tpu.matmul %29, %25, %cst_29 {dimension_numbers = #tpu.dot_dimension_numbers<[1], [0], [0], [1], [0, 0, 1, 1], [], []>} : vector<128x128xbf16>, vector<128x128xbf16>, vector<128x128xf32> -> vector<128x128xf32>
      %31 = vector.broadcast %26 : vector<1x128xf32> to vector<128x128xf32>
      %32 = arith.addf %30, %31 : vector<128x128xf32>
      %c0_30 = arith.constant 0 : index
      %c0_31 = arith.constant 0 : index
      %c0_32 = arith.constant 0 : index
      %33 = vector.load %arg7[%c0_30, %c0_31, %c0_32] : memref<2x128x128xf32, #tpu.memory_space<vmem>>, vector<1x128x128xf32>
      %34 = vector.shape_cast %33 : vector<1x128x128xf32> to vector<128x128xf32>
      %35 = vector.shape_cast %32 : vector<128x128xf32> to vector<1x128x128xf32>
      tpu.vector_store %arg7[%c0_30, %c0_31, %c0_32], %35 {strides = array<i32>} : memref<2x128x128xf32, #tpu.memory_space<vmem>>, vector<1x128x128xf32>,
      %c1_33 = arith.constant 1 : index
      %c0_34 = arith.constant 0 : index
      %c0_35 = arith.constant 0 : index
      %36 = vector.load %arg8[%c1_33, %c0_34, %c0_35] : memref<2x128x128xf32, #tpu.memory_space<vmem>>, vector<1x128x128xf32>
      %37 = vector.shape_cast %36 : vector<1x128x128xf32> to vector<128x128xf32>
      %38 = arith.truncf %37 : vector<128x128xf32> to vector<128x128xbf16>
      %cst_36 = arith.constant dense<0.000000e+00> : vector<128x128xf32>
      %39 = tpu.matmul %38, %25, %cst_36 {dimension_numbers = #tpu.dot_dimension_numbers<[1], [0], [0], [1], [0, 0, 1, 1], [], []>} : vector<128x128xbf16>, vector<128x128xbf16>, vector<128x128xf32> -> vector<128x128xf32>
      %40 = vector.broadcast %26 : vector<1x128xf32> to vector<128x128xf32>
      %41 = arith.addf %39, %40 : vector<128x128xf32>
      %c1_37 = arith.constant 1 : index
      %c0_38 = arith.constant 0 : index
      %c0_39 = arith.constant 0 : index
      %42 = vector.load %arg7[%c1_37, %c0_38, %c0_39] : memref<2x128x128xf32, #tpu.memory_space<vmem>>, vector<1x128x128xf32>
      %43 = vector.shape_cast %42 : vector<1x128x128xf32> to vector<128x128xf32>
      %44 = vector.shape_cast %41 : vector<128x128xf32> to vector<1x128x128xf32>
      tpu.vector_store %arg7[%c1_37, %c0_38, %c0_39], %44 {strides = array<i32>} : memref<2x128x128xf32, #tpu.memory_space<vmem>>, vector<1x128x128xf32>,
    } else {
    }
    return
  }
  func.func @transform_0(%arg0: i32, %arg1: i32, %arg2: i32) -> (i32, i32, i32) {
    %c0_i32 = arith.constant 0 : i32
    %c0_i32_0 = arith.constant 0 : i32
    return %arg1, %arg2, %c0_i32 : i32, i32, i32
  }
  func.func @transform_1(%arg0: i32, %arg1: i32, %arg2: i32) -> (i32, i32) {
    %c0_i32 = arith.constant 0 : i32
    return %arg0, %arg2 : i32, i32
  }
  func.func @transform_2(%arg0: i32, %arg1: i32, %arg2: i32) -> (i32, i32) {
    %c0_i32 = arith.constant 0 : i32
    %c0_i32_0 = arith.constant 0 : i32
    %c0_i32_1 = arith.constant 0 : i32
    return %c0_i32, %c0_i32_0 : i32, i32
  }
  func.func @transform_3(%arg0: i32, %arg1: i32, %arg2: i32) -> (i32, i32) {
    %c0_i32 = arith.constant 0 : i32
    %c0_i32_0 = arith.constant 0 : i32
    %c0_i32_1 = arith.constant 0 : i32
    return %c0_i32, %c0_i32_0 : i32, i32
  }
  func.func @transform_4(%arg0: i32, %arg1: i32, %arg2: i32) -> (i32, i32, i32) {
    %c0_i32 = arith.constant 0 : i32
    %c0_i32_0 = arith.constant 0 : i32
    return %arg1, %arg0, %c0_i32 : i32, i32, i32
  }
}

</mosaic_0001>

<bundles_post_ra>
// kernel: tpu_custom_call.1
= control target key start
LH: loop header
LB: loop body
LE: loop exit
PB: predicated region body
PF: predicated region fallthrough
CT: control target
= control target key end

     0   :  { %9 = vsyncpa [#allocation4], 0  ;;  %s1440_s0 = inlined_call_operand.hbm [shape: bf16[2,128,128], index: 0, kind: input, shape index: {}]   ;;  %s1441_s1 = inlined_call_operand.hbm [shape: bf16[128,128], index: 1, kind: input, shape index: {}]   ;;  %s1442_s2 = inlined_call_operand.hbm [shape: bf16[128,128], index: 2, kind: input, shape index: {}]   ;;  %s1443_s3 = inlined_call_operand.vmem [shape: f32[1,128], index: 3, kind: input, shape index: {}]   ;;  %s1444_s4 = inlined_call_operand.hbm [shape: f32[2,128,128], index: 4, kind: output, shape index: {}]  }
   0x1   :  { %10 = vsyncpa [#allocation7], 0 }
   0x2   :  { %11 = vsyncpa [#allocation5], 0  ;;  %s1306_s15 = smov [#allocation6]   ;;  %s1307_s17 = smov [#allocation3]  }
   0x3   :  { %s29_s16 = sshll.u32 %s1306_s15, 4  ;;  %s17_s18 = sshll.u32 %s1307_s17, 4  ;;  %s30_s16 = int_to_ptr.vmem [resolvable:$true] %s29_s16  ;;  %s1339_s18 = int_to_ptr.vmem [resolvable:$true] %s17_s18 }
   0x4   :  { %s1212_s21 = scalar_lea.hbm %s1441_s1, 1024 }
   0x5   :  { %p1213_p0 = scmp.ne.s32.totalorder %s1441_s1, %s1212_s21  ;;  %p1216_p1 = scmp.lt.u32.totalorder %s1212_s21, %s1441_s1 }
   0x7   :  { %p1218_p2 = pnand %p1216_p1, %p1213_p0 }
   0x9   :  { %1221 = shalt.err (!%p1218_p2)
}
   0xa   :  { %s1222_s26 = scalar_lea.vmem %s30_s16, 1024  ;;  %p1227_p4 = scmp.lt.s32.totalorder %s30_s16, %s30_s16 }
   0xb   :  { %p1223_p3 = scmp.ne.s32.totalorder %s30_s16, %s1222_s26  ;;  %p1228_p5 = scmp.lt.s32.totalorder %s1222_s26, %s1222_s26 }
   0xd   :  { %p1229_p6 = por %p1228_p5, %p1227_p4 }
   0xf   :  { %p1230_p7 = pnand %p1229_p6, %p1223_p3 }
  0x11   :  { %1233 = shalt.err (!%p1230_p7)
}
  0x12   :  { %s1308_s27 = smov 64   ;;  %s1309_s28 = smov 4  }
  0x13   :  { %35 = dma.hbm_to_vmem [thread:$0]  %s1441_s1, 1024, %s30_s16, [#allocation7], %s1308_s27, %s1308_s27, %s1309_s28  }
  0x14   :  { %s1234_s7 = scalar_lea.hbm %s1440_s0, 2048 }
  0x15   :  { %p1235_p8 = scmp.ne.s32.totalorder %s1440_s0, %s1234_s7  ;;  %p1238_p9 = scmp.lt.u32.totalorder %s1234_s7, %s1440_s0 }
  0x17   :  { %p1240_p10 = pnand %p1238_p9, %p1235_p8 }
  0x19   :  { %1243 = shalt.err (!%p1240_p10)
}
  0x1a   :  { %s1244_s12 = scalar_lea.vmem %s1339_s18, 2048  ;;  %p1249_p12 = scmp.lt.s32.totalorder %s1339_s18, %s1339_s18 }
  0x1b   :  { %p1245_p11 = scmp.ne.s32.totalorder %s1339_s18, %s1244_s12  ;;  %p1250_p13 = scmp.lt.s32.totalorder %s1244_s12, %s1244_s12 }
  0x1d   :  { %p1251_p0 = por %p1250_p13, %p1249_p12 }
  0x1f   :  { %p1252_p1 = pnand %p1251_p0, %p1245_p11 }
  0x21   :  { %1255 = shalt.err (!%p1252_p1)
}
  0x22   :  { %23 = dma.hbm_to_vmem [thread:$0]  %s1440_s0, 2048, %s1339_s18, [#allocation4], %s1308_s27, %s1308_s27, %s1309_s28  }
  0x23   :  { %s1310_s14 = smov [#allocation8]   ;;  %s1256_s19 = scalar_lea.hbm %s1442_s2, 1024 }
  0x24   :  { %s41_s15 = sshll.u32 %s1310_s14, 4  ;;  %p1257_p2 = scmp.ne.s32.totalorder %s1442_s2, %s1256_s19  ;;  %s42_s15 = int_to_ptr.vmem [resolvable:$true] %s41_s15 }
  0x25   :  { %p1260_p3 = scmp.lt.u32.totalorder %s1256_s19, %s1442_s2 }
  0x27   :  { %p1262_p4 = pnand %p1260_p3, %p1257_p2 }
  0x29   :  { %1265 = shalt.err (!%p1262_p4)
}
  0x2a   :  { %s1266_s24 = scalar_lea.vmem %s42_s15, 1024  ;;  %p1271_p6 = scmp.lt.s32.totalorder %s42_s15, %s42_s15 }
  0x2b   :  { %p1267_p5 = scmp.ne.s32.totalorder %s42_s15, %s1266_s24  ;;  %p1272_p7 = scmp.lt.s32.totalorder %s1266_s24, %s1266_s24 }
  0x2d   :  { %p1273_p8 = por %p1272_p7, %p1271_p6 }
  0x2f   :  { %p1274_p9 = pnand %p1273_p8, %p1267_p5 }
  0x31   :  { %1277 = shalt.err (!%p1274_p9)
}
  0x32   :  { %47 = dma.hbm_to_vmem [thread:$0]  %s1442_s2, 1024, %s42_s15, [#allocation7], %s1308_s27, %s1308_s27, %s1309_s28  }
  0x33   :  { %1300 = dma.done.wait [#allocation4], 2048  }
  0x34   :  { %1301 = vsyncadd [#allocation4], 4294965248 }
  0x35   :  { %1302 = dma.done.wait [#allocation7], 2048  }
  0x36   :  { %1303 = vsyncadd [#allocation7], 4294965248  ;;  %v1180_v0 = vld [vmem:[#allocation3] sm:$0xff]   ;;  %v1182_v2 = vld [vmem:[#allocation3 + $0x8] sm:$0xff]  }
  0x37   :  { %v1181_v1 = vld [vmem:[#allocation3 + $0x40] sm:$0xff]   ;;  %1044 = vmatprep.subr.bf16.mxu0 %v1180_v0  ;;  %v1183_v3 = vld [vmem:[#allocation3 + $0x48] sm:$0xff]   ;;  %v1184_v4 = vld [vmem:[#allocation3 + $0x10] sm:$0xff]  }
  0x38   :  { %1076 = vmatprep.subr.bf16.mxu1 %v1181_v1  ;;  %1045 = vmatpush3.bf16.msra.mxu0 %v1180_v0  ;;  %v1185_v5 = vld [vmem:[#allocation3 + $0x50] sm:$0xff]   ;;  %v1186_v6 = vld [vmem:[#allocation3 + $0x18] sm:$0xff]   ;;  %v1188_v8 = vld [vmem:[#allocation3 + $0x20] sm:$0xff]  }
  0x39   :  { %1077 = vmatpush3.bf16.msra.mxu1 %v1181_v1  ;;  %1046 = vmatprep.subr.bf16.mxu0 %v1182_v2  ;;  %v1187_v7 = vld [vmem:[#allocation3 + $0x58] sm:$0xff]   ;;  %v1189_v9 = vld [vmem:[#allocation3 + $0x60] sm:$0xff]   ;;  %v1190_v10 = vld [vmem:[#allocation3 + $0x28] sm:$0xff]  }
  0x3a   :  { %1078 = vmatprep.subr.bf16.mxu1 %v1183_v3  ;;  %v1196_v11 = vld [vmem:[#allocation6] sm:$0xff]   ;;  %v1191_v12 = vld [vmem:[#allocation3 + $0x68] sm:$0xff]   ;;  %v1192_v13 = vld [vmem:[#allocation3 + $0x30] sm:$0xff]  }
  0x3b   :  { %1060 = vmatprep.mubr.bf16.mxu0 %v1196_v11  ;;  %1092 = vmatprep.mubr.bf16.mxu1 %v1196_v11  ;;  %v1193_v14 = vld [vmem:[#allocation3 + $0x70] sm:$0xff]   ;;  %v1194_v15 = vld [vmem:[#allocation3 + $0x38] sm:$0xff]   ;;  %v1204_v17 = vld [vmem:[#allocation8] sm:$0xff]  }
  0x3c   :  { %1047 = vmatpush3.bf16.msra.mxu0 %v1182_v2  ;;  %v1195_v16 = vld [vmem:[#allocation3 + $0x78] sm:$0xff]   ;;  %v1197_v18 = vld [vmem:[#allocation6 + $0x8] sm:$0xff]   ;;  %v1198_v19 = vld [vmem:[#allocation6 + $0x10] sm:$0xff]  }
  0x3d   :  { %1079 = vmatpush3.bf16.msra.mxu1 %v1183_v3  ;;  %1048 = vmatprep.subr.bf16.mxu0 %v1184_v4  ;;  %v1205_v20 = vld [vmem:[#allocation8 + $0x8] sm:$0xff]   ;;  %v1206_v21 = vld [vmem:[#allocation8 + $0x10] sm:$0xff]   ;;  %v1199_v22 = vld [vmem:[#allocation6 + $0x18] sm:$0xff]  }
  0x3e   :  { %1080 = vmatprep.subr.bf16.mxu1 %v1185_v5  ;;  %v1200_v23 = vld [vmem:[#allocation6 + $0x20] sm:$0xff]   ;;  %v1207_v24 = vld [vmem:[#allocation8 + $0x18] sm:$0xff]   ;;  %v1201_v26 = vld [vmem:[#allocation6 + $0x28] sm:$0xff]  }
  0x3f   :  { %v1208_v25 = vld [vmem:[#allocation8 + $0x20] sm:$0xff]   ;;  %v1202_v27 = vld [vmem:[#allocation6 + $0x30] sm:$0xff]   ;;  %v1209_v28 = vld [vmem:[#allocation8 + $0x28] sm:$0xff]  }
  0x40   :  { %1049 = vmatpush3.bf16.msra.mxu0 %v1184_v4  ;;  %v1210_v29 = vld [vmem:[#allocation8 + $0x30] sm:$0xff]   ;;  %v1203_v30 = vld [vmem:[#allocation6 + $0x38] sm:$0xff]  }
  0x41   :  { %1081 = vmatpush3.bf16.msra.mxu1 %v1185_v5  ;;  %1050 = vmatprep.subr.bf16.mxu0 %v1186_v6  ;;  %v1211_v31 = vld [vmem:[#allocation8 + $0x38] sm:$0xff]  }
  0x42   :  { %1082 = vmatprep.subr.bf16.mxu1 %v1187_v7 }
  0x44   :  { %1051 = vmatpush3.bf16.msra.mxu0 %v1186_v6 }
  0x45   :  { %1083 = vmatpush3.bf16.msra.mxu1 %v1187_v7  ;;  %1052 = vmatprep.subr.bf16.mxu0 %v1188_v8 }
  0x46   :  { %1084 = vmatprep.subr.bf16.mxu1 %v1189_v9 }
  0x48   :  { %1053 = vmatpush3.bf16.msra.mxu0 %v1188_v8 }
  0x49   :  { %1085 = vmatpush3.bf16.msra.mxu1 %v1189_v9  ;;  %1054 = vmatprep.subr.bf16.mxu0 %v1190_v10 }
  0x4a   :  { %1086 = vmatprep.subr.bf16.mxu1 %v1191_v12 }
  0x4c   :  { %1055 = vmatpush3.bf16.msra.mxu0 %v1190_v10 }
  0x4d   :  { %1087 = vmatpush3.bf16.msra.mxu1 %v1191_v12  ;;  %1056 = vmatprep.subr.bf16.mxu0 %v1192_v13 }
  0x4e   :  { %1088 = vmatprep.subr.bf16.mxu1 %v1193_v14 }
  0x50   :  { %1057 = vmatpush3.bf16.msra.mxu0 %v1192_v13 }
  0x51   :  { %1089 = vmatpush3.bf16.msra.mxu1 %v1193_v14  ;;  %1058 = vmatprep.subr.bf16.mxu0 %v1194_v15 }
  0x52   :  { %1090 = vmatprep.subr.bf16.mxu1 %v1195_v16 }
  0x54   :  { %1059 = vmatpush3.bf16.msra.mxu0 %v1194_v15 }
  0x55   :  { %1091 = vmatpush3.bf16.msra.mxu1 %v1195_v16  ;;  %1108 = vmatprep.subr.bf16.mxu0 %v1204_v17  ;;  %v1394_v16 = vld [vmem:[%s1443_s3] ss:$0 sm:$0xff]  ;;  %s1311_s3 = smov [#allocation9]  }
  0x56   :  { %1140 = vmatprep.subr.bf16.mxu1 %v1204_v17  ;;  %s934_s26 = sshll.u32 %s1311_s3, 4  ;;  %s935_s26 = int_to_ptr.vmem [resolvable:$true] %s934_s26 }
  0x57   :  { %1061 = vmatmul.mubr.bf16.vlgmr.msra.gmra.mrb[0].mxu0 %v1197_v18  ;;  %s1278_s27 = scalar_lea.vmem %s935_s26, 4096  ;;  %p1283_p11 = scmp.lt.s32.totalorder %s935_s26, %s935_s26 }
  0x58   :  { %1093 = vmatmul.mubr.bf16.vlgmr.msra.gmra.mrb[0].mxu1 %v1197_v18  ;;  %1064 = vmatprep.mubr.bf16.mxu0 %v1198_v19  ;;  %p1279_p10 = scmp.ne.s32.totalorder %s935_s26, %s1278_s27  ;;  %p1284_p12 = scmp.lt.s32.totalorder %s1278_s27, %s1278_s27 }
  0x59   :  { %1096 = vmatprep.mubr.bf16.mxu1 %v1198_v19  ;;  %1109 = vmatpush3.bf16.msra.mxu0 %v1204_v17 }
  0x5a   :  { %1141 = vmatpush3.bf16.msra.mxu1 %v1204_v17  ;;  %1110 = vmatprep.subr.bf16.mxu0 %v1205_v20  ;;  %p1285_p13 = por %p1284_p12, %p1283_p11 }
  0x5b   :  { %1142 = vmatprep.subr.bf16.mxu1 %v1205_v20 }
  0x5c   :  { %p1286_p0 = pnand %p1285_p13, %p1279_p10 }
  0x5d   :  { %1111 = vmatpush3.bf16.msra.mxu0 %v1205_v20 }
  0x5e   :  { %1143 = vmatpush3.bf16.msra.mxu1 %v1205_v20  ;;  %1112 = vmatprep.subr.bf16.mxu0 %v1206_v21 }
  0x5f   :  { %1065 = vmatmul.mubr.bf16.gmra.mrb[4].mxu0 %v1199_v22  ;;  %1144 = vmatprep.subr.bf16.mxu1 %v1206_v21 }
  0x60   :  { %1097 = vmatmul.mubr.bf16.gmra.mrb[4].mxu1 %v1199_v22  ;;  %1068 = vmatprep.mubr.bf16.mxu0 %v1200_v23 }
  0x61   :  { %1100 = vmatprep.mubr.bf16.mxu1 %v1200_v23  ;;  %1113 = vmatpush3.bf16.msra.mxu0 %v1206_v21 }
  0x62   :  { %1145 = vmatpush3.bf16.msra.mxu1 %v1206_v21  ;;  %1114 = vmatprep.subr.bf16.mxu0 %v1207_v24 }
  0x63   :  { %1146 = vmatprep.subr.bf16.mxu1 %v1207_v24 }
  0x65   :  { %1115 = vmatpush3.bf16.msra.mxu0 %v1207_v24 }
  0x66   :  { %1147 = vmatpush3.bf16.msra.mxu1 %v1207_v24  ;;  %1116 = vmatprep.subr.bf16.mxu0 %v1208_v25 }
  0x67   :  { %1069 = vmatmul.mubr.bf16.gmra.mrb[8].mxu0 %v1201_v26  ;;  %1148 = vmatprep.subr.bf16.mxu1 %v1208_v25 }
  0x68   :  { %1101 = vmatmul.mubr.bf16.gmra.mrb[8].mxu1 %v1201_v26  ;;  %1072 = vmatprep.mubr.bf16.mxu0 %v1202_v27 }
  0x69   :  { %1104 = vmatprep.mubr.bf16.mxu1 %v1202_v27  ;;  %1117 = vmatpush3.bf16.msra.mxu0 %v1208_v25 }
  0x6a   :  { %1149 = vmatpush3.bf16.msra.mxu1 %v1208_v25  ;;  %1118 = vmatprep.subr.bf16.mxu0 %v1209_v28 }
  0x6b   :  { %1150 = vmatprep.subr.bf16.mxu1 %v1209_v28 }
  0x6d   :  { %1119 = vmatpush3.bf16.msra.mxu0 %v1209_v28 }
  0x6e   :  { %1151 = vmatpush3.bf16.msra.mxu1 %v1209_v28  ;;  %1120 = vmatprep.subr.bf16.mxu0 %v1210_v29 }
  0x6f   :  { %1073 = vmatmul.mubr.bf16.gmra.mrb[12].mxu0 %v1203_v30  ;;  %1152 = vmatprep.subr.bf16.mxu1 %v1210_v29 }
  0x70   :  { %1105 = vmatmul.mubr.bf16.gmra.mrb[12].mxu1 %v1203_v30 }
  0x71   :  { %1121 = vmatpush3.bf16.msra.mxu0 %v1210_v29 }
  0x72   :  { %1153 = vmatpush3.bf16.msra.mxu1 %v1210_v29  ;;  %1122 = vmatprep.subr.bf16.mxu0 %v1211_v31 }
  0x73   :  { %1154 = vmatprep.subr.bf16.mxu1 %v1211_v31 }
  0x75   :  { %1123 = vmatpush3.bf16.msra.mxu0 %v1211_v31 }
  0x76   :  { %1155 = vmatpush3.bf16.msra.mxu1 %v1211_v31 }
 0x12a   :  { %v1062_v32 = vpop.f32.mrb[0].mxu0 }
 0x12b   :  { %v1094_v33 = vpop.f32.mrb[0].mxu1  ;;  %v274_v34 = vpop.f32.mrb[1].mxu0 }
 0x12c   :  { %v485_v35 = vpop.f32.mrb[1].mxu1  ;;  %v1063_v36 = vpop.f32.mrb[2].mxu0 }
 0x12d   :  { %v617_v37 = vpack.c.bf16 %v1063_v36, %v1062_v32  ;;  %v1095_v38 = vpop.f32.mrb[2].mxu1  ;;  %v277_v39 = vpop.f32.mrb[3].mxu0 }
 0x12e   :  { %v808_v40 = vpack.c.bf16 %v1095_v38, %v1094_v33  ;;  %v616_v41 = vpack.c.bf16 %v277_v39, %v274_v34  ;;  %v488_v42 = vpop.f32.mrb[3].mxu1 }
 0x12f   :  { %v807_v43 = vpack.c.bf16 %v488_v42, %v485_v35 }
 0x130   :  { %1124 = vmatprep.mubr.bf16.mxu0 %v616_v41 }
 0x131   :  { %1156 = vmatprep.mubr.bf16.mxu1 %v807_v43  ;;  %1125 = vmatmul.mubr.bf16.vlgmr.msra.gmra.mrb[16].mxu0 %v617_v37 }
 0x132   :  { %1157 = vmatmul.mubr.bf16.vlgmr.msra.gmra.mrb[16].mxu1 %v808_v40  ;;  %v1066_v44 = vpop.f32.mrb[4].mxu0 }
 0x133   :  { %v1098_v45 = vpop.f32.mrb[4].mxu1  ;;  %v290_v46 = vpop.f32.mrb[5].mxu0 }
 0x134   :  { %v501_v47 = vpop.f32.mrb[5].mxu1  ;;  %v1067_v48 = vpop.f32.mrb[6].mxu0 }
 0x135   :  { %v619_v49 = vpack.c.bf16 %v1067_v48, %v1066_v44  ;;  %v1099_v50 = vpop.f32.mrb[6].mxu1  ;;  %v293_v51 = vpop.f32.mrb[7].mxu0 }
 0x136   :  { %v810_v52 = vpack.c.bf16 %v1099_v50, %v1098_v45  ;;  %v618_v53 = vpack.c.bf16 %v293_v51, %v290_v46  ;;  %v504_v54 = vpop.f32.mrb[7].mxu1 }
 0x137   :  { %v809_v55 = vpack.c.bf16 %v504_v54, %v501_v47 }
 0x138   :  { %1128 = vmatprep.mubr.bf16.mxu0 %v618_v53 }
 0x139   :  { %1160 = vmatprep.mubr.bf16.mxu1 %v809_v55  ;;  %1129 = vmatmul.mubr.bf16.gmra.mrb[20].mxu0 %v619_v49 }
 0x13a   :  { %1161 = vmatmul.mubr.bf16.gmra.mrb[20].mxu1 %v810_v52  ;;  %v1070_v56 = vpop.f32.mrb[8].mxu0 }
 0x13b   :  { %v1102_v57 = vpop.f32.mrb[8].mxu1  ;;  %v306_v58 = vpop.f32.mrb[9].mxu0 }
 0x13c   :  { %v517_v59 = vpop.f32.mrb[9].mxu1  ;;  %v1071_v60 = vpop.f32.mrb[10].mxu0 }
 0x13d   :  { %v621_v61 = vpack.c.bf16 %v1071_v60, %v1070_v56  ;;  %v1103_v62 = vpop.f32.mrb[10].mxu1  ;;  %v309_v63 = vpop.f32.mrb[11].mxu0 }
 0x13e   :  { %v812_v0 = vpack.c.bf16 %v1103_v62, %v1102_v57  ;;  %v620_v1 = vpack.c.bf16 %v309_v63, %v306_v58  ;;  %v520_v2 = vpop.f32.mrb[11].mxu1 }
 0x13f   :  { %v811_v3 = vpack.c.bf16 %v520_v2, %v517_v59 }
 0x140   :  { %1132 = vmatprep.mubr.bf16.mxu0 %v620_v1 }
 0x141   :  { %1164 = vmatprep.mubr.bf16.mxu1 %v811_v3  ;;  %1133 = vmatmul.mubr.bf16.gmra.mrb[24].mxu0 %v621_v61 }
 0x142   :  { %1165 = vmatmul.mubr.bf16.gmra.mrb[24].mxu1 %v812_v0  ;;  %v1074_v4 = vpop.f32.mrb[12].mxu0 }
 0x143   :  { %v1106_v5 = vpop.f32.mrb[12].mxu1  ;;  %v322_v6 = vpop.f32.mrb[13].mxu0 }
 0x144   :  { %v533_v7 = vpop.f32.mrb[13].mxu1  ;;  %v1075_v8 = vpop.f32.mrb[14].mxu0 }
 0x145   :  { %v623_v9 = vpack.c.bf16 %v1075_v8, %v1074_v4  ;;  %v1107_v10 = vpop.f32.mrb[14].mxu1  ;;  %v325_v11 = vpop.f32.mrb[15].mxu0 }
 0x146   :  { %v814_v12 = vpack.c.bf16 %v1107_v10, %v1106_v5  ;;  %v622_v13 = vpack.c.bf16 %v325_v11, %v322_v6  ;;  %v536_v14 = vpop.f32.mrb[15].mxu1 }
 0x147   :  { %v813_v15 = vpack.c.bf16 %v536_v14, %v533_v7 }
 0x148   :  { %1136 = vmatprep.mubr.bf16.mxu0 %v622_v13 }
 0x149   :  { %1168 = vmatprep.mubr.bf16.mxu1 %v813_v15  ;;  %1137 = vmatmul.mubr.bf16.gmra.mrb[28].mxu0 %v623_v9 }
 0x14a   :  { %1169 = vmatmul.mubr.bf16.gmra.mrb[28].mxu1 %v814_v12 }
 0x204   :  { %v1126_v17 = vpop.f32.mrb[16].mxu0 }
 0x205   :  { %v721_v18 = vadd.f32 %v1126_v17, %v1394_v16  ;;  %v1158_v19 = vpop.f32.mrb[16].mxu1  ;;  %v712_v20 = vpop.f32.mrb[17].mxu0 }
 0x206   :  { %v858_v21 = vadd.f32 %v1158_v19, %v1394_v16  ;;  %v713_v22 = vadd.f32 %v1394_v16, %v712_v20  ;;  %v849_v23 = vpop.f32.mrb[17].mxu1  ;;  %v1127_v24 = vpop.f32.mrb[18].mxu0 }
 0x207   :  { %777 = vst [vmem:[#allocation9 + $0x10] sm:$0xff] %v721_v18  ;;  %v850_v25 = vadd.f32 %v1394_v16, %v849_v23  ;;  %v724_v26 = vadd.f32 %v1127_v24, %v1394_v16  ;;  %v1159_v27 = vpop.f32.mrb[18].mxu1  ;;  %v715_v28 = vpop.f32.mrb[19].mxu0 }
 0x208   :  { %915 = vst [vmem:[#allocation9 + $0x90] sm:$0xff] %v858_v21  ;;  %775 = vst [vmem:[#allocation9] sm:$0xff] %v713_v22  ;;  %v861_v29 = vadd.f32 %v1159_v27, %v1394_v16  ;;  %v716_v30 = vadd.f32 %v1394_v16, %v715_v28  ;;  %v852_v31 = vpop.f32.mrb[19].mxu1 }
 0x209   :  { %913 = vst [vmem:[#allocation9 + $0x80] sm:$0xff] %v850_v25  ;;  %778 = vst [vmem:[#allocation9 + $0x18] sm:$0xff] %v724_v26  ;;  %v853_v32 = vadd.f32 %v1394_v16, %v852_v31 }
 0x20a   :  { %916 = vst [vmem:[#allocation9 + $0x98] sm:$0xff] %v861_v29  ;;  %776 = vst [vmem:[#allocation9 + $0x8] sm:$0xff] %v716_v30 }
 0x20b   :  { %914 = vst [vmem:[#allocation9 + $0x88] sm:$0xff] %v853_v32 }
 0x20c   :  { %v1130_v33 = vpop.f32.mrb[20].mxu0 }
 0x20d   :  { %v737_v34 = vadd.f32 %v1130_v33, %v1394_v16  ;;  %v1162_v35 = vpop.f32.mrb[20].mxu1  ;;  %v728_v36 = vpop.f32.mrb[21].mxu0 }
 0x20e   :  { %v874_v37 = vadd.f32 %v1162_v35, %v1394_v16  ;;  %v729_v38 = vadd.f32 %v1394_v16, %v728_v36  ;;  %v865_v39 = vpop.f32.mrb[21].mxu1  ;;  %v1131_v40 = vpop.f32.mrb[22].mxu0 }
 0x20f   :  { %781 = vst [vmem:[#allocation9 + $0x30] sm:$0xff] %v737_v34  ;;  %v866_v41 = vadd.f32 %v1394_v16, %v865_v39  ;;  %v740_v42 = vadd.f32 %v1131_v40, %v1394_v16  ;;  %v1163_v43 = vpop.f32.mrb[22].mxu1  ;;  %v731_v44 = vpop.f32.mrb[23].mxu0 }
 0x210   :  { %919 = vst [vmem:[#allocation9 + $0xb0] sm:$0xff] %v874_v37  ;;  %779 = vst [vmem:[#allocation9 + $0x20] sm:$0xff] %v729_v38  ;;  %v877_v45 = vadd.f32 %v1163_v43, %v1394_v16  ;;  %v732_v46 = vadd.f32 %v1394_v16, %v731_v44  ;;  %v868_v47 = vpop.f32.mrb[23].mxu1 }
 0x211   :  { %917 = vst [vmem:[#allocation9 + $0xa0] sm:$0xff] %v866_v41  ;;  %782 = vst [vmem:[#allocation9 + $0x38] sm:$0xff] %v740_v42  ;;  %v869_v48 = vadd.f32 %v1394_v16, %v868_v47 }
 0x212   :  { %920 = vst [vmem:[#allocation9 + $0xb8] sm:$0xff] %v877_v45  ;;  %780 = vst [vmem:[#allocation9 + $0x28] sm:$0xff] %v732_v46 }
 0x213   :  { %918 = vst [vmem:[#allocation9 + $0xa8] sm:$0xff] %v869_v48 }
 0x214   :  { %v1134_v49 = vpop.f32.mrb[24].mxu0 }
 0x215   :  { %v753_v50 = vadd.f32 %v1134_v49, %v1394_v16  ;;  %v1166_v51 = vpop.f32.mrb[24].mxu1  ;;  %v744_v52 = vpop.f32.mrb[25].mxu0 }
 0x216   :  { %v890_v53 = vadd.f32 %v1166_v51, %v1394_v16  ;;  %v745_v54 = vadd.f32 %v1394_v16, %v744_v52  ;;  %v881_v55 = vpop.f32.mrb[25].mxu1  ;;  %v1135_v56 = vpop.f32.mrb[26].mxu0 }
 0x217   :  { %785 = vst [vmem:[#allocation9 + $0x50] sm:$0xff] %v753_v50  ;;  %v882_v57 = vadd.f32 %v1394_v16, %v881_v55  ;;  %v756_v58 = vadd.f32 %v1135_v56, %v1394_v16  ;;  %v1167_v59 = vpop.f32.mrb[26].mxu1  ;;  %v747_v60 = vpop.f32.mrb[27].mxu0 }
 0x218   :  { %923 = vst [vmem:[#allocation9 + $0xd0] sm:$0xff] %v890_v53  ;;  %783 = vst [vmem:[#allocation9 + $0x40] sm:$0xff] %v745_v54  ;;  %v893_v61 = vadd.f32 %v1167_v59, %v1394_v16  ;;  %v748_v62 = vadd.f32 %v1394_v16, %v747_v60  ;;  %v884_v63 = vpop.f32.mrb[27].mxu1 }
 0x219   :  { %921 = vst [vmem:[#allocation9 + $0xc0] sm:$0xff] %v882_v57  ;;  %786 = vst [vmem:[#allocation9 + $0x58] sm:$0xff] %v756_v58  ;;  %v885_v0 = vadd.f32 %v1394_v16, %v884_v63 }
 0x21a   :  { %924 = vst [vmem:[#allocation9 + $0xd8] sm:$0xff] %v893_v61  ;;  %784 = vst [vmem:[#allocation9 + $0x48] sm:$0xff] %v748_v62 }
 0x21b   :  { %922 = vst [vmem:[#allocation9 + $0xc8] sm:$0xff] %v885_v0 }
 0x21c   :  { %v1138_v1 = vpop.f32.mrb[28].mxu0 }
 0x21d   :  { %v769_v2 = vadd.f32 %v1138_v1, %v1394_v16  ;;  %v1170_v3 = vpop.f32.mrb[28].mxu1  ;;  %v760_v4 = vpop.f32.mrb[29].mxu0 }
 0x21e   :  { %v906_v5 = vadd.f32 %v1170_v3, %v1394_v16  ;;  %v761_v6 = vadd.f32 %v1394_v16, %v760_v4  ;;  %v897_v7 = vpop.f32.mrb[29].mxu1  ;;  %v1139_v8 = vpop.f32.mrb[30].mxu0 }
 0x21f   :  { %789 = vst [vmem:[#allocation9 + $0x70] sm:$0xff] %v769_v2  ;;  %v898_v9 = vadd.f32 %v1394_v16, %v897_v7  ;;  %v772_v10 = vadd.f32 %v1139_v8, %v1394_v16  ;;  %v1171_v11 = vpop.f32.mrb[30].mxu1  ;;  %v763_v12 = vpop.f32.mrb[31].mxu0 }
 0x220   :  { %927 = vst [vmem:[#allocation9 + $0xf0] sm:$0xff] %v906_v5  ;;  %787 = vst [vmem:[#allocation9 + $0x60] sm:$0xff] %v761_v6  ;;  %v909_v13 = vadd.f32 %v1171_v11, %v1394_v16  ;;  %v764_v14 = vadd.f32 %v1394_v16, %v763_v12  ;;  %v900_v15 = vpop.f32.mrb[31].mxu1 }
 0x221   :  { %925 = vst [vmem:[#allocation9 + $0xe0] sm:$0xff] %v898_v9  ;;  %790 = vst [vmem:[#allocation9 + $0x78] sm:$0xff] %v772_v10  ;;  %v901_v17 = vadd.f32 %v1394_v16, %v900_v15 }
 0x222   :  { %928 = vst [vmem:[#allocation9 + $0xf8] sm:$0xff] %v909_v13  ;;  %788 = vst [vmem:[#allocation9 + $0x68] sm:$0xff] %v764_v14 }
 0x223   :  { %926 = vst [vmem:[#allocation9 + $0xe8] sm:$0xff] %v901_v17 }
 0x224   :  { %1289 = shalt.err (!%p1286_p0)
}
 0x225   :  { %s1290_s30 = scalar_lea.hbm %s1444_s4, 4096 }
 0x226   :  { %p1291_p1 = scmp.ne.s32.totalorder %s1444_s4, %s1290_s30  ;;  %p1294_p2 = scmp.lt.u32.totalorder %s1290_s30, %s1444_s4 }
 0x228   :  { %p1296_p3 = pnand %p1294_p2, %p1291_p1 }
 0x22a   :  { %1299 = shalt.err (!%p1296_p3)
}
 0x22b   :  { %s1312_s9 = smov 128   ;;  %s1313_s10 = smov 8  }
 0x22c   :  { %940 = dma.vmem_to_hbm [thread:$0]  %s935_s26, 4096, %s1444_s4, [#allocation5], %s1312_s9, %s1312_s9, %s1313_s10  }
 0x22d   :  { %1304 = dma.done.wait [#allocation5], 4096  }
 0x22e   :  { %1305 = vsyncadd [#allocation5], 4294963200 }
 0x22f   :  { %944 = vsyncpa [#allocation4], 1 }
 0x230   :  { %945 = vsyncpa [#allocation7], 1 }
 0x231   :  { %946 = vsyncpa [#allocation5], 1 }

</bundles_post_ra>
